<compile_context>
chip_gen: v7x
topology: tpu7x:2x2x1
jax: 0.10.0
libtpu: 0.0.40
codegen_flags: <defaults>
</compile_context>

<pallas_src>
import numpy as np

import jax
import jax.numpy as jnp
from jax.experimental import pallas as pl
from jax.experimental.pallas import tpu as pltpu


# <= 48 MiB: inside v7x's 64 MiB/TC physical VMEM, well above v5e's 16 MiB
# scoped default (where the explicit limit matters most).
VMEM_LIMIT_BYTES = 48 * 1024 * 1024


def _round_up(x, m):
    return (x + m - 1) // m * m


def _choose_tiles(n):
    """Return (n_pad, dst_tile, src_tile) for the edge-softmax kernel."""
    if n <= 256:
        # whole graph fits in VMEM: single full-array tile (full-dim blocks
        # are exempt from the (8,128)/(32,128) divisibility rule)
        n_pad = _round_up(n, 8)
        return n_pad, n_pad, n_pad
    # large graphs: big asymmetric tiles (dst > src) so the src feature block
    # is re-streamed fewer times; keeps >=2 dst tiles for v7x dual-TC sharding.
    n_pad = _round_up(n, 256)
    tile_s = 256
    tile_d = 512 if (n_pad % 512 == 0 and n_pad >= 1024) else 256
    return n_pad, tile_d, tile_s


# ----------------------------------------------------------------------------
# Kernel 1: projection + attention coefficients (all heads, lane-dense layouts)
# ----------------------------------------------------------------------------
def _proj_kernel(x_ref, w_ref, alT_ref, ar_ref, feat_ref, elT_ref, er_ref):
    # feat = x @ W   (bf16 operands on the MXU, f32 accumulation)
    feat = jnp.dot(x_ref[...], w_ref[...], preferred_element_type=jnp.float32)
    feat_bf = feat.astype(jnp.bfloat16)
    feat_ref[...] = feat_bf                               # (TN, H*F) lane-dense

    # el^T[h, n] = sum_f attn_l[h, f] * feat[n, h*F+f]  -> (H, TN), lane-dense.
    # dot_general contracting last-with-last == the canonical trans_b matmul.
    elT_ref[...] = jax.lax.dot_general(
        alT_ref[...], feat_bf,
        dimension_numbers=(((1,), (1,)), ((), ())),
        preferred_element_type=jnp.float32)

    # er[n, h] = sum_f feat[n, h*F+f] * attn_r[h, f]    -> (TN, H)
    er_ref[...] = jnp.dot(feat_bf, ar_ref[...],
                          preferred_element_type=jnp.float32)


def _build_attn_mats(attn_l, attn_r):
    """alT: (H, H*F) with attn_l[h] in row h / block h.
       ar : (H*F, H) with attn_r[h] in column h / block h."""
    attn_l = np.asarray(attn_l, np.float32)
    attn_r = np.asarray(attn_r, np.float32)
    H, F = attn_l.shape
    alT = np.zeros((H, H * F), np.float32)
    ar = np.zeros((H * F, H), np.float32)
    for h in range(H):
        alT[h, h * F:(h + 1) * F] = attn_l[h]
        ar[h * F:(h + 1) * F, h] = attn_r[h]
    return jnp.asarray(alT), jnp.asarray(ar)


# ----------------------------------------------------------------------------
# Kernel 2: flash-style masked edge-softmax + attention-weighted aggregation
# ----------------------------------------------------------------------------
def _expand_heads(v, out_feats):
    """(TD, H) -> (TD, H*out_feats): repeat each head's column F times (lanes)."""
    td, num_h = v.shape
    if num_h == 1:
        return jnp.broadcast_to(v, (td, out_feats))
    return jnp.concatenate(
        [jnp.broadcast_to(v[:, h:h + 1], (td, out_feats)) for h in range(num_h)],
        axis=-1)


def _make_attn_agg_kernel(num_heads, out_feats, attn_neg_slope, act_neg_slope):
    H, F = num_heads, out_feats
    NEG = -1e30          # Python float -> jaxpr literal (never a captured const)

    def kernel(adj_ref, elT_ref, er_ref, feat_ref, b_ref, o_ref,
               m_scr, l_scr, acc_scr):
        s_idx = pl.program_id(1)

        @pl.when(s_idx == 0)
        def _init():
            m_scr[...] = jnp.full_like(m_scr, NEG)
            l_scr[...] = jnp.zeros_like(l_scr)
            acc_scr[...] = jnp.zeros_like(acc_scr)

        # Additive mask bias, computed ONCE per (dst, src) tile (hoisted out of
        # the head loop): 0 on edges, -1e30 on non-edges / padding.
        mask_bias = jnp.where(adj_ref[...] > 0, 0.0, NEG).astype(jnp.float32)

        feat_s = feat_ref[...]                 # (TS, H*F) bf16
        er = er_ref[...]                       # (TD, H)   f32
        elT = elT_ref[...]                     # (H, TS)   f32
        m_prev = m_scr[...]                    # (TD, H)   f32

        m_cols, s_cols, pv_cols = [], [], []
        for h in range(H):
            # e[d, s] = leaky_relu(er[d, h] + el[s, h]) + mask_bias   (f32 VPU)
            e = er[:, h:h + 1] + elT[h:h + 1, :]              # (TD, TS)
            e = jnp.maximum(e, attn_neg_slope * e)            # 2-op leaky_relu
            e = e + mask_bias
            m_h = jnp.maximum(m_prev[:, h:h + 1],
                              jnp.max(e, axis=-1, keepdims=True))   # (TD, 1)
            p = jnp.exp(e - m_h)                              # f32 softmax math
            s_cols.append(jnp.sum(p, axis=-1, keepdims=True))
            pv_cols.append(jnp.dot(p.astype(jnp.bfloat16),
                                   feat_s[:, h * F:(h + 1) * F],
                                   preferred_element_type=jnp.float32))
            m_cols.append(m_h)

        m_new = jnp.concatenate(m_cols, axis=-1)              # (TD, H)
        p_sum = jnp.concatenate(s_cols, axis=-1)              # (TD, H)
        pv = jnp.concatenate(pv_cols, axis=-1)                # (TD, H*F)
        scale = jnp.exp(m_prev - m_new)                       # (TD, H)

        # single full-lane-width read-modify-write of each scratch buffer
        l_scr[...] = scale * l_scr[...] + p_sum
        acc_scr[...] = _expand_heads(scale, F) * acc_scr[...] + pv
        m_scr[...] = m_new

        @pl.when(s_idx == pl.num_programs(1) - 1)
        def _finalize():
            l = l_scr[...]
            m = m_scr[...]
            inv = 1.0 / jnp.maximum(l, 1e-30)
            # m stayed at -1e30  <=>  zero in-degree / padded dst row -> the
            # aggregate is exactly 0 (DGL allow_zero_in_degree=True semantics).
            norm = jnp.where(m > -1e29, inv, 0.0)             # (TD, H)
            out = acc_scr[...] * _expand_heads(norm, F) + b_ref[...]
            if act_neg_slope is not None:
                out = jnp.maximum(out, act_neg_slope * out)   # F.leaky_relu
            o_ref[...] = out.astype(o_ref.dtype)              # lane-dense store

    return kernel


# ----------------------------------------------------------------------------
# Per-layer wrapper
# ----------------------------------------------------------------------------
def gat_layer(x_pad, adj_pad, params, *, tile_d, tile_s, out_dtype):
    """One GATConv layer (flatten agg) on padded inputs (N_pad rows)."""
    n_pad, f_in = x_pad.shape
    H = params["num_heads"]
    F = params["out_feats"]
    HF = H * F

    w = params["w"].astype(jnp.bfloat16)
    alT, ar = _build_attn_mats(params["attn_l"], params["attn_r"])
    alT = alT.astype(jnp.bfloat16)
    ar = ar.astype(jnp.bfloat16)
    bias = params["bias"].astype(jnp.float32)

    cparams_1d = pltpu.CompilerParams(
        dimension_semantics=("parallel",), vmem_limit_bytes=VMEM_LIMIT_BYTES)
    cparams_2d = pltpu.CompilerParams(
        dimension_semantics=("parallel", "arbitrary"),
        vmem_limit_bytes=VMEM_LIMIT_BYTES)

    # --- kernel 1: projection + attention coefficients -----------------------
    tile_n = tile_d
    n1 = n_pad // tile_n
    feat, elT, er = pl.pallas_call(
        _proj_kernel,
        out_shape=(jax.ShapeDtypeStruct((n_pad, HF), jnp.bfloat16),
                   jax.ShapeDtypeStruct((H, n_pad), jnp.float32),
                   jax.ShapeDtypeStruct((n_pad, H), jnp.float32)),
        grid_spec=pltpu.PrefetchScalarGridSpec(
            num_scalar_prefetch=0, grid=(n1,),
            in_specs=[pl.BlockSpec((tile_n, f_in), lambda i: (i, 0)),
                      pl.BlockSpec((f_in, HF), lambda i: (0, 0)),
                      pl.BlockSpec((H, HF), lambda i: (0, 0)),
                      pl.BlockSpec((HF, H), lambda i: (0, 0))],
            out_specs=[pl.BlockSpec((tile_n, HF), lambda i: (i, 0)),
                       pl.BlockSpec((H, tile_n), lambda i: (0, i)),
                       pl.BlockSpec((tile_n, H), lambda i: (i, 0))]),
        compiler_params=cparams_1d,
    )(x_pad.astype(jnp.bfloat16), w, alT, ar)

    # --- kernel 2: flash-style edge-softmax + aggregation ---------------------
    nd = n_pad // tile_d
    ns = n_pad // tile_s
    kernel2 = _make_attn_agg_kernel(H, F, attn_neg_slope=0.2,
                                    act_neg_slope=params["act_neg_slope"])
    out = pl.pallas_call(
        kernel2,
        out_shape=jax.ShapeDtypeStruct((n_pad, HF), out_dtype),
        grid_spec=pltpu.PrefetchScalarGridSpec(
            num_scalar_prefetch=0, grid=(nd, ns),
            in_specs=[pl.BlockSpec((tile_d, tile_s), lambda d, s: (d, s)),  # adj i8
                      pl.BlockSpec((H, tile_s), lambda d, s: (0, s)),       # el^T
                      pl.BlockSpec((tile_d, H), lambda d, s: (d, 0)),       # er
                      pl.BlockSpec((tile_s, HF), lambda d, s: (s, 0)),      # feat
                      pl.BlockSpec((1, HF), lambda d, s: (0, 0))],          # bias
            out_specs=pl.BlockSpec((tile_d, HF), lambda d, s: (d, 0)),
            scratch_shapes=[pltpu.VMEM((tile_d, H), jnp.float32),    # running max
                            pltpu.VMEM((tile_d, H), jnp.float32),    # running denom
                            pltpu.VMEM((tile_d, HF), jnp.float32)]),  # accumulator
        compiler_params=cparams_2d,
    )(adj_pad, elT, er, feat, bias)
    return out


# ----------------------------------------------------------------------------
# Model
# ----------------------------------------------------------------------------
def init_params(key, input_size, hidden_size, output_size, num_layers, num_heads):
    """Deterministic parameter init mirroring UnsupervisedGAT.__init__ shapes."""
    layers = []
    for i in range(num_layers):
        in_f = input_size if i == 0 else hidden_size
        if i + 1 < num_layers:
            heads = num_heads
            out_f = hidden_size // num_heads
            act = 0.01          # F.leaky_relu default negative_slope
        else:
            heads = 1
            out_f = output_size
            act = None          # last layer: activation=None
        key, k1, k2, k3 = jax.random.split(key, 4)
        w = jax.random.normal(k1, (in_f, heads * out_f), jnp.float32) * (
            jnp.sqrt(2.0) / jnp.sqrt(float(in_f)))
        attn_l = jax.random.normal(k2, (heads, out_f), jnp.float32) * 0.1
        attn_r = jax.random.normal(k3, (heads, out_f), jnp.float32) * 0.1
        bias = jnp.zeros((1, heads * out_f), jnp.float32)
        layers.append(dict(w=w, attn_l=attn_l, attn_r=attn_r, bias=bias,
                           num_heads=heads, out_feats=out_f, act_neg_slope=act))
    return layers


def unsupervised_gat_forward(adj, features, layers, layernorm=False):
    n = features.shape[0]
    n_pad, tile_d, tile_s = _choose_tiles(n)

    x = jnp.pad(features.astype(jnp.float32), ((0, n_pad - n), (0, 0)))
    # int8 0/1 mask: adjacency is the only O(N^2) stream -> half the traffic
    adj_i8 = jnp.pad((adj > 0).astype(jnp.int8),
                     ((0, n_pad - n), (0, n_pad - n)))

    for li, p in enumerate(layers):
        last = (li == len(layers) - 1)
        x = gat_layer(x, adj_i8, p, tile_d=tile_d, tile_s=tile_s,
                      out_dtype=jnp.float32 if last else jnp.bfloat16)

    node_x = x[:n].astype(jnp.float32)
    # readout='avg' (AvgPooling over the single graph) -> shape (1, D)
    pool_x = jnp.mean(node_x, axis=0, keepdims=True)
    if layernorm:
        def ln(v):
            mu = jnp.mean(v, axis=-1, keepdims=True)
            var = jnp.var(v, axis=-1, keepdims=True)
            return (v - mu) / jnp.sqrt(var + 1e-5)
        node_x = ln(node_x)
        pool_x = ln(pool_x)
    return pool_x, node_x


if __name__ == "__main__":
    key = jax.random.PRNGKey(0)
    N = 16                       # nodes in the (single) graph
    input_size, hidden_size, output_size = 32, 32, 32
    num_layers, num_heads = 2, 4

    kf, kp, ka = jax.random.split(key, 3)
    features = jax.random.normal(kf, (N, input_size), jnp.float32)

    # deterministic graph: self loops + ring + a few random edges
    idx = jnp.arange(N)
    adj = jnp.zeros((N, N), jnp.float32)
    adj = adj.at[idx, idx].set(1.0)                 # self loops
    adj = adj.at[idx, (idx + 1) % N].set(1.0)       # ring: src=(i+1) -> dst=i
    rand_edges = (jax.random.uniform(ka, (N, N)) < 0.2).astype(jnp.float32)
    adj = jnp.maximum(adj, rand_edges)

    layers = init_params(kp, input_size, hidden_size, output_size,
                         num_layers, num_heads)

    pool_x, node_x = unsupervised_gat_forward(adj, features, layers,
                                              layernorm=False)
    jax.block_until_ready((pool_x, node_x))

    assert pool_x.shape == (1, output_size)
    assert node_x.shape == (N, output_size)
    print("KERNEL_OK")
</pallas_src>

<mosaic_0001>
module attributes {stable_mosaic.version = 11 : i64} {
  func.func @_proj_kernel(%arg0: i32, %arg1: memref<16x32xbf16, #tpu.memory_space<vmem>>, %arg2: memref<32x32xbf16, #tpu.memory_space<vmem>>, %arg3: memref<4x32xbf16, #tpu.memory_space<vmem>>, %arg4: memref<32x4xbf16, #tpu.memory_space<vmem>>, %arg5: memref<16x32xbf16, #tpu.memory_space<vmem>>, %arg6: memref<4x16xf32, #tpu.memory_space<vmem>>, %arg7: memref<16x4xf32, #tpu.memory_space<vmem>>) attributes {dimension_semantics = [#tpu.dimension_semantics<parallel>], iteration_bounds = array<i64: 1>, scalar_prefetch = 0 : i64, scratch_operands = 0 : i64, tpu.core_type = #tpu.core_type<tc>, window_params = [{transform_indices = @transform_0, window_bounds = array<i64: 16, 32>}, {pipeline_mode = #tpu.pipeline_mode<synchronous>, transform_indices = @transform_1, window_bounds = array<i64: 32, 32>}, {pipeline_mode = #tpu.pipeline_mode<synchronous>, transform_indices = @transform_2, window_bounds = array<i64: 4, 32>}, {pipeline_mode = #tpu.pipeline_mode<synchronous>, transform_indices = @transform_3, window_bounds = array<i64: 32, 4>}, {transform_indices = @transform_4, window_bounds = array<i64: 16, 32>}, {transform_indices = @transform_5, window_bounds = array<i64: 4, 16>}, {transform_indices = @transform_6, window_bounds = array<i64: 16, 4>}]} {
    %c0 = arith.constant 0 : index
    %c0_0 = arith.constant 0 : index
    %0 = vector.load %arg1[%c0, %c0_0] : memref<16x32xbf16, #tpu.memory_space<vmem>>, vector<16x32xbf16>
    %c0_1 = arith.constant 0 : index
    %c0_2 = arith.constant 0 : index
    %1 = vector.load %arg2[%c0_1, %c0_2] : memref<32x32xbf16, #tpu.memory_space<vmem>>, vector<32x32xbf16>
    %cst = arith.constant dense<0.000000e+00> : vector<16x32xf32>
    %2 = tpu.matmul %0, %1, %cst {dimension_numbers = #tpu.dot_dimension_numbers<[1], [0], [0], [1], [0, 0, 1, 1], [], []>} : vector<16x32xbf16>, vector<32x32xbf16>, vector<16x32xf32> -> vector<16x32xf32>
    %3 = arith.truncf %2 : vector<16x32xf32> to vector<16x32xbf16>
    %c0_3 = arith.constant 0 : index
    %c0_4 = arith.constant 0 : index
    %4 = vector.load %arg5[%c0_3, %c0_4] : memref<16x32xbf16, #tpu.memory_space<vmem>>, vector<16x32xbf16>
    tpu.vector_store %arg5[%c0_3, %c0_4], %3 {strides = array<i32>} : memref<16x32xbf16, #tpu.memory_space<vmem>>, vector<16x32xbf16>,
    %c0_5 = arith.constant 0 : index
    %c0_6 = arith.constant 0 : index
    %5 = vector.load %arg3[%c0_5, %c0_6] : memref<4x32xbf16, #tpu.memory_space<vmem>>, vector<4x32xbf16>
    %cst_7 = arith.constant dense<0.000000e+00> : vector<4x16xf32>
    %6 = tpu.matmul %5, %3, %cst_7 {dimension_numbers = #tpu.dot_dimension_numbers<[1], [1], [0], [0], [0, 0, 1, 0], [], []>} : vector<4x32xbf16>, vector<16x32xbf16>, vector<4x16xf32> -> vector<4x16xf32>
    %c0_8 = arith.constant 0 : index
    %c0_9 = arith.constant 0 : index
    %7 = vector.load %arg6[%c0_8, %c0_9] : memref<4x16xf32, #tpu.memory_space<vmem>>, vector<4x16xf32>
    tpu.vector_store %arg6[%c0_8, %c0_9], %6 {strides = array<i32>} : memref<4x16xf32, #tpu.memory_space<vmem>>, vector<4x16xf32>,
    %c0_10 = arith.constant 0 : index
    %c0_11 = arith.constant 0 : index
    %8 = vector.load %arg4[%c0_10, %c0_11] : memref<32x4xbf16, #tpu.memory_space<vmem>>, vector<32x4xbf16>
    %cst_12 = arith.constant dense<0.000000e+00> : vector<16x4xf32>
    %9 = tpu.matmul %3, %8, %cst_12 {dimension_numbers = #tpu.dot_dimension_numbers<[1], [0], [0], [1], [0, 0, 1, 1], [], []>} : vector<16x32xbf16>, vector<32x4xbf16>, vector<16x4xf32> -> vector<16x4xf32>
    %c0_13 = arith.constant 0 : index
    %c0_14 = arith.constant 0 : index
    %10 = vector.load %arg7[%c0_13, %c0_14] : memref<16x4xf32, #tpu.memory_space<vmem>>, vector<16x4xf32>
    tpu.vector_store %arg7[%c0_13, %c0_14], %9 {strides = array<i32>} : memref<16x4xf32, #tpu.memory_space<vmem>>, vector<16x4xf32>,
    return
  }
  func.func @transform_0(%arg0: i32) -> (i32, i32) {
    %c0_i32 = arith.constant 0 : i32
    %c0_i32_0 = arith.constant 0 : i32
    return %arg0, %c0_i32 : i32, i32
  }
  func.func @transform_1(%arg0: i32) -> (i32, i32) {
    %c0_i32 = arith.constant 0 : i32
    %c0_i32_0 = arith.constant 0 : i32
    %c0_i32_1 = arith.constant 0 : i32
    return %c0_i32, %c0_i32_0 : i32, i32
  }
  func.func @transform_2(%arg0: i32) -> (i32, i32) {
    %c0_i32 = arith.constant 0 : i32
    %c0_i32_0 = arith.constant 0 : i32
    %c0_i32_1 = arith.constant 0 : i32
    return %c0_i32, %c0_i32_0 : i32, i32
  }
  func.func @transform_3(%arg0: i32) -> (i32, i32) {
    %c0_i32 = arith.constant 0 : i32
    %c0_i32_0 = arith.constant 0 : i32
    %c0_i32_1 = arith.constant 0 : i32
    return %c0_i32, %c0_i32_0 : i32, i32
  }
  func.func @transform_4(%arg0: i32) -> (i32, i32) {
    %c0_i32 = arith.constant 0 : i32
    %c0_i32_0 = arith.constant 0 : i32
    return %arg0, %c0_i32 : i32, i32
  }
  func.func @transform_5(%arg0: i32) -> (i32, i32) {
    %c0_i32 = arith.constant 0 : i32
    %c0_i32_0 = arith.constant 0 : i32
    return %c0_i32, %arg0 : i32, i32
  }
  func.func @transform_6(%arg0: i32) -> (i32, i32) {
    %c0_i32 = arith.constant 0 : i32
    %c0_i32_0 = arith.constant 0 : i32
    return %arg0, %c0_i32 : i32, i32
  }
}

</mosaic_0001>

<bundles_post_ra>
// kernel: tpu_custom_call.1
= control target key start
LH: loop header
LB: loop body
LE: loop exit
PB: predicated region body
PF: predicated region fallthrough
CT: control target
= control target key end

     0   :  { %12 = vsyncpa [#allocation3], 0  ;;  %s495_s0 = inlined_call_operand.hbm [shape: bf16[16,32], index: 0, kind: input, shape index: {}]   ;;  %s496_s1 = inlined_call_operand.vmem [shape: bf16[32,32], index: 1, kind: input, shape index: {}]   ;;  %s497_s2 = inlined_call_operand.vmem [shape: bf16[4,32], index: 2, kind: input, shape index: {}]   ;;  %s498_s3 = inlined_call_operand.vmem [shape: bf16[32,4], index: 3, kind: input, shape index: {}]   ;;  %s499_s4 = inlined_call_operand.hbm [shape: bf16[16,32], index: 4, kind: output, shape index: {0}]   ;;  %s500_s5 = inlined_call_operand.hbm [shape: f32[4,16], index: 5, kind: output, shape index: {1}]   ;;  %s501_s6 = inlined_call_operand.vmem [shape: f32[16,4], index: 6, kind: output, shape index: {2}]  }
   0x1   :  { %13 = vsyncpa [#allocation4], 0 }
   0x2   :  { %14 = vsyncpa [#allocation7], 0  ;;  %s386_s21 = smov [#allocation2]   ;;  %s314_s25 = scalar_lea.hbm %s495_s0, 128 }
   0x3   :  { %s20_s22 = sshll.u32 %s386_s21, 4  ;;  %p315_p0 = scmp.ne.s32.totalorder %s495_s0, %s314_s25  ;;  %s21_s22 = int_to_ptr.vmem [resolvable:$true] %s20_s22 }
   0x4   :  { %p318_p1 = scmp.lt.u32.totalorder %s314_s25, %s495_s0 }
   0x6   :  { %p320_p2 = pnand %p318_p1, %p315_p0 }
   0x8   :  { %323 = shalt.err (!%p320_p2)
}
   0x9   :  { %s324_s30 = scalar_lea.vmem %s21_s22, 128  ;;  %p329_p4 = scmp.lt.s32.totalorder %s21_s22, %s21_s22 }
   0xa   :  { %p325_p3 = scmp.ne.s32.totalorder %s21_s22, %s324_s30  ;;  %p330_p5 = scmp.lt.s32.totalorder %s324_s30, %s324_s30 }
   0xc   :  { %p331_p6 = por %p330_p5, %p329_p4 }
   0xe   :  { %p332_p7 = pnand %p331_p6, %p325_p3 }
  0x10   :  { %335 = shalt.err (!%p332_p7)
}
  0x11   :  { %s387_s7 = smov 64   ;;  %s388_s8 = smov 4  }
  0x12   :  { %26 = dma.hbm_to_vmem [thread:$0]  %s495_s0, 128, %s21_s22, [#allocation3], %s387_s7, %s387_s7, %s388_s8  }
  0x13   :  { %380 = dma.done.wait [#allocation3], 128  }
  0x14   :  { %381 = vsyncadd [#allocation3], 4294967168  ;;  %v389_v0 = vmov 0.0   ;;  %vm390_vm0 = vmmov 0   ;;  %v309_v1 = vld [vmem:[%s496_s1] sm:$0xff]   ;;  %v310_v2 = vld [vmem:[%s496_s1 + $0x8] sm:$0xff]  }
  0x15   :  { %280 = vmatprep.subr.bf16.mxu0 %v389_v0  ;;  %284 = vmatprep.mubr.msk.bf16.mxu0 %vm390_vm0, %v389_v0  ;;  %v311_v3 = vld [vmem:[#allocation2] sm:$0xff]   ;;  %vm60_vm1 = vcmask 261120   ;;  %v313_v5 = vld [vmem:[%s498_s3 + $0x8] sm:$0xff]   ;;  %vm113_vm2 = vcmask 257024  }
  0x16   :  { %288 = vmatprep.subr.bf16.mxu1 %v389_v0  ;;  %290 = vmatprep.mubr.msk.bf16.mxu1 %vm390_vm0, %v389_v0  ;;  %v312_v4 = vld [vmem:[%s498_s3] sm:$0xff]   ;;  %s391_s3 = smov [#allocation5]  }
  0x17   :  { %281 = vmatpush3.bf16.msra.mxu0 %v309_v1  ;;  %v116_v14 = vld [vmem:[%s497_s2] sm:$0x3]  ;;  %s230_s19 = sshll.u32 %s391_s3, 4  ;;  %s231_s19 = int_to_ptr.vmem [resolvable:$true] %s230_s19 }
  0x18   :  { %282 = vmatprep.subr.bf16.mxu0 %v389_v0  ;;  %s336_s20 = scalar_lea.vmem %s231_s19, 128  ;;  %p341_p9 = scmp.lt.s32.totalorder %s231_s19, %s231_s19 }
  0x19   :  { %p337_p8 = scmp.ne.s32.totalorder %s231_s19, %s336_s20  ;;  %p342_p10 = scmp.lt.s32.totalorder %s336_s20, %s336_s20 }
  0x1b   :  { %283 = vmatpush3.bf16.msra.mxu0 %v310_v2  ;;  %p343_p11 = por %p342_p10, %p341_p9 }
  0x1c   :  { %294 = vmatprep.subr.bf16.mxu0 %v389_v0 }
  0x1d   :  { %p344_p12 = pnand %p343_p11, %p337_p8 }
  0x1e   :  { %285 = vmatmul.mubr.msk.bf16.vlgmr.msra.gmra.mrb[0].mxu0 %vm60_vm1, %v311_v3 }
  0x1f   :  { %295 = vmatpush3.bf16.msra.mxu0 %v312_v4  ;;  %298 = vmatprep.mubr.msk.bf16.mxu0 %vm390_vm0, %v389_v0 }
  0x20   :  { %296 = vmatprep.subr.bf16.mxu0 %v389_v0 }
  0x23   :  { %297 = vmatpush3.bf16.msra.mxu0 %v313_v5 }
  0xf1   :  { %v98_v6 = vpop.f32.mrb[0].mxu0 }
  0xf2   :  { %v270_v7 = vpack.c.bf16 %v98_v6, %v98_v6  ;;  %v286_v8 = vpop.f32.mrb[1].mxu0 }
  0xf3   :  { %v101_v9 = vpop.f32.mrb[2].mxu0 }
  0xf4   :  { %v105_v10 = vpack.c.bf16 %v101_v9, %v98_v6  ;;  %v271_v11 = vpack.c.bf16 %v101_v9, %v101_v9  ;;  %v287_v12 = vpop.f32.mrb[3].mxu0  ;;  %114 = vst.msk [vmem:[#allocation5] sm:$0xf] %vm113_vm2, %v270_v7 }
  0xf6   :  { %299 = vmatmul.mubr.msk.bf16.vlgmr.msra.gmra.mrb[4].mxu0 %vm60_vm1, %v105_v10  ;;  %v121_v13 = vsel %vm60_vm1, %v105_v10, 0  ;;  %115 = vst.msk [vmem:[#allocation5 + $0x4] sm:$0xf] %vm113_vm2, %v271_v11 }
  0xf7   :  { %289 = vmatpush3.bf16.xpose.msra.mxu1 %v121_v13 }
  0xfe   :  { %291 = vmatmul.mubr.msk.bf16.vlgmr.msra.gmra.mrb[0].mxu1 %vm60_vm1, %v116_v14 }
  0xff   :  { %347 = shalt.err (!%p344_p12)
}
 0x100   :  { %s348_s23 = scalar_lea.hbm %s499_s4, 128 }
 0x101   :  { %p349_p13 = scmp.ne.s32.totalorder %s499_s4, %s348_s23  ;;  %p352_p0 = scmp.lt.u32.totalorder %s348_s23, %s499_s4 }
 0x103   :  { %p354_p1 = pnand %p352_p0, %p349_p13 }
 0x105   :  { %357 = shalt.err (!%p354_p1)
}
 0x106   :  { %236 = dma.vmem_to_hbm [thread:$0]  %s231_s19, 128, %s499_s4, [#allocation4], %s387_s7, %s387_s7, %s388_s8   ;;  %vm222_vm3 = vcmask 31744   ;;  %vm163_vm4 = vcmask 125952  }
 0x107   :  { %s392_s11 = smov [#allocation6]  }
 0x108   :  { %s243_s12 = sshll.u32 %s392_s11, 4  ;;  %s244_s12 = int_to_ptr.vmem [resolvable:$true] %s243_s12 }
 0x109   :  { %s358_s4 = scalar_lea.vmem %s244_s12, 64  ;;  %p363_p3 = scmp.lt.s32.totalorder %s244_s12, %s244_s12 }
 0x10a   :  { %p359_p2 = scmp.ne.s32.totalorder %s244_s12, %s358_s4  ;;  %p364_p4 = scmp.lt.s32.totalorder %s358_s4, %s358_s4 }
 0x10c   :  { %p365_p5 = por %p364_p4, %p363_p3 }
 0x10e   :  { %p366_p6 = pnand %p365_p5, %p359_p2 }
 0x1c9   :  { %v215_v15 = vpop.f32.mrb[4].mxu0 }
 0x1ca   :  { %223 = vst.msk [vmem:[%s501_s6] sm:$0xff] %vm222_vm3, %v215_v15  ;;  %v300_v16 = vpop.f32.mrb[5].mxu0 }
 0x1cb   :  { %v218_v17 = vpop.f32.mrb[6].mxu0 }
 0x1cc   :  { %224 = vst.msk [vmem:[%s501_s6 + $0x8] sm:$0xff] %vm222_vm3, %v218_v17  ;;  %v301_v18 = vpop.f32.mrb[7].mxu0 }
 0x1d1   :  { %v157_v19 = vpop.f32.mrb[0].mxu1 }
 0x1d2   :  { %v292_v20 = vpop.f32.mrb[1].mxu1  ;;  %164 = vst.msk [vmem:[#allocation6] sm:$0xf] %vm163_vm4, %v157_v19 }
 0x1d3   :  { %v160_v21 = vpop.f32.mrb[2].mxu1 }
 0x1d4   :  { %369 = shalt.err (!%p366_p6)
}
 0x1d5   :  { %s370_s6 = scalar_lea.hbm %s500_s5, 64 }
 0x1d6   :  { %p371_p7 = scmp.ne.s32.totalorder %s500_s5, %s370_s6  ;;  %p374_p8 = scmp.lt.u32.totalorder %s370_s6, %s500_s5 }
 0x1d8   :  { %p376_p9 = pnand %p374_p8, %p371_p7 }
 0x1da   :  { %379 = shalt.err (!%p376_p9)
}
 0x1db   :  { %246 = dma.vmem_to_hbm [thread:$0]  %s244_s12, 64, %s500_s5, [#allocation7]   ;;  %v293_v22 = vpop.f32.mrb[3].mxu1 }
 0x1dc   :  { %382 = dma.done.wait [#allocation4], 128  }
 0x1dd   :  { %383 = vsyncadd [#allocation4], 4294967168 }
 0x1de   :  { %384 = dma.done.wait [#allocation7], 64  }
 0x1df   :  { %385 = vsyncadd [#allocation7], 4294967232 }
 0x1e0   :  { %257 = vsyncpa [#allocation3], 1 }
 0x1e1   :  { %258 = vsyncpa [#allocation4], 1 }
 0x1e2   :  { %259 = vsyncpa [#allocation7], 1 }

</bundles_post_ra>
